<compile_context>
chip_gen: v5e
topology: v5e:2x2
jax: 0.10.0
libtpu: 0.0.40
codegen_flags: <defaults>
</compile_context>

<pallas_src>
import numpy as np
import jax
import jax.numpy as jnp
from jax.experimental import pallas as pl
from jax.experimental.pallas import tpu as pltpu

OUT_MIN = 0.0
OUT_MAX = 1.0

LANE = 128
SUBLANE = 8


def _round_up(n, m):
    return ((n + m - 1) // m) * m


def _choose_block_rows(n_rows, f_in, t_out, t_pad, *, max_rows=1024,
                       vmem_budget=8 << 20):
    """Row-tile size: bounded VMEM working set + enough blocks for 2 TCs."""
    # Double-buffered streamed input (tn,F) + output (tn,T) plus ~2 live copies
    # of the (tn, Tp) matmul/elementwise intermediate, all f32.
    row_bytes = 4 * (2 * f_in + 2 * t_out + 2 * t_pad)
    cap = max(SUBLANE, vmem_budget // row_bytes)
    tn = min(max_rows, cap)
    # v7x has 2 TensorCores sharding the "parallel" grid axis: aim for >= 4
    # blocks when there are enough rows (no-op / harmless on v5e & v6e).
    if n_rows >= 4 * SUBLANE:
        tn = min(tn, max(SUBLANE, -(-n_rows // 4)))
    tn = min(tn, n_rows)
    return _round_up(tn, SUBLANE)


def transform_pallas(x, gather, a, b, c, is_cat, *, block_rows=1024,
                     out_dtype=jnp.float32):
    """Fused TabScaler.transform.

    x:      (N, F) raw tabular input (numeric values + categorical codes)
    gather: (F, T) static 0/1 column-selection matrix
            (T = Fn + Tc output columns: numeric first, then expanded cats)
    a, b:   (T,) affine coefficients (scaled = x*a + b); 0 for cat columns
    c:      (T,) category centers; 0 for numeric columns
    is_cat: (T,) 1.0 for soft-one-hot columns, 0.0 for numeric columns
    returns (N, T) in `out_dtype`
    """
    N, F = x.shape
    Fg, T = gather.shape
    assert Fg == F, "gather matrix rows must match input feature count"

    Tp = _round_up(T, LANE)  # lane-dense parameter / matmul width

    # Tiny fit-time constants: padding them is free (no per-batch HBM cost).
    gather_p = jnp.pad(jnp.asarray(gather, jnp.float32), ((0, 0), (0, Tp - T)))
    params = jnp.stack([
        jnp.pad(jnp.asarray(v, jnp.float32).reshape(T), (0, Tp - T))
        for v in (a, b, c, is_cat)
    ])  # (4, Tp)

    tn = _choose_block_rows(N, F, T, Tp, max_rows=block_rows)
    grid = (pl.cdiv(N, tn),)  # ragged last block handled by Pallas masking

    def kernel(x_ref, g_ref, p_ref, o_ref):
        # x_ref: (tn, F) raw rows; g_ref: (F, Tp) one-hot gather; p_ref: (4, Tp)
        # MXU is otherwise idle -> in-kernel gather/repeat-interleave for free.
        xg = jnp.dot(x_ref[...], g_ref[...],
                     preferred_element_type=jnp.float32)      # (tn, Tp)
        p = p_ref[...]
        a_r = p[0:1, :]
        b_r = p[1:2, :]
        c_r = p[2:3, :]
        m_r = p[3:4, :]
        # numeric min-max scaling via fit-time precomputed affine coefficients
        affine = xg * a_r + b_r
        # soft one-hot encoding: max(1 - (code - category)^2, 0)
        d = xg - c_r
        enc = jnp.maximum(1.0 - d * d, 0.0)
        res = jnp.where(m_r > 0.5, enc, affine)
        # store only the T valid lanes (padding columns never reach HBM)
        o_ref[...] = res[:, :T].astype(o_ref.dtype)

    return pl.pallas_call(
        kernel,
        out_shape=jax.ShapeDtypeStruct((N, T), out_dtype),
        grid=grid,
        in_specs=[
            pl.BlockSpec((tn, F), lambda i: (i, 0)),    # streamed rows
            pl.BlockSpec((F, Tp), lambda i: (0, 0)),    # resident gather matrix
            pl.BlockSpec((4, Tp), lambda i: (0, 0)),    # resident packed params
        ],
        out_specs=pl.BlockSpec((tn, T), lambda i: (i, 0)),
        compiler_params=pltpu.CompilerParams(
            dimension_semantics=("parallel",)),
    )(x.astype(jnp.float32), gather_p, params)


if __name__ == "__main__":
    key = jax.random.PRNGKey(0)

    # Small tabular problem: 16 rows, 8 features, columns 2 and 5 categorical.
    N, F = 16, 8
    cat_idx = [2, 5]
    num_idx = [i for i in range(F) if i not in cat_idx]
    n_cats = {2: 3, 5: 4}

    k1, k2, k3 = jax.random.split(key, 3)
    num_vals = jax.random.uniform(k1, (N, len(num_idx)), jnp.float32,
                                  minval=-2.0, maxval=5.0)
    cat2 = jax.random.randint(k2, (N,), 0, n_cats[2]).astype(jnp.float32)
    cat5 = jax.random.randint(k3, (N,), 0, n_cats[5]).astype(jnp.float32)

    x_np = np.zeros((N, F), np.float32)
    x_np[:, num_idx] = np.asarray(num_vals)
    x_np[:, 2] = np.asarray(cat2)
    x_np[:, 5] = np.asarray(cat5)
    x = jnp.asarray(x_np)

    # --- "fit" (deterministic parameter setup, plain numpy glue) ---
    x_num = x_np[:, num_idx]                                   # (N, Fn)
    x_min = x_num.min(axis=0)
    x_max = x_num.max(axis=0)
    rng = x_max - x_min
    eps = np.finfo(np.float32).eps
    # _handle_zeros_in_scale_torch: near-constant features get scale 1.0
    scale = np.where(rng < 10.0 * eps, np.float32(1.0), rng).astype(np.float32)

    # precompute affine coefficients: scaled = x * a + b
    a_num = (OUT_MAX - OUT_MIN) / scale
    b_num = OUT_MIN - x_min * a_num

    # OneHotEncoder.fit: sorted unique values per categorical column
    categories = [np.unique(x_np[:, ci]).astype(np.float32) for ci in cat_idx]
    cat_vals = np.concatenate(categories)                      # (Tc,)
    Fn, Tc = len(num_idx), cat_vals.shape[0]
    T = Fn + Tc

    # static one-hot column-selection matrix (gather + repeat_interleave fused
    # into the kernel as an MXU matmul)
    G = np.zeros((F, T), np.float32)
    for j, ci in enumerate(num_idx):
        G[ci, j] = 1.0
    col = Fn
    for ci, cats in zip(cat_idx, categories):
        G[ci, col:col + len(cats)] = 1.0
        col += len(cats)

    a_vec = np.concatenate([a_num, np.zeros((Tc,), np.float32)])
    b_vec = np.concatenate([b_num, np.zeros((Tc,), np.float32)])
    c_vec = np.concatenate([np.zeros((Fn,), np.float32), cat_vals])
    m_vec = np.concatenate([np.zeros((Fn,), np.float32), np.ones((Tc,), np.float32)])

    # --- forward (Pallas kernel) ---
    out = transform_pallas(x, G, a_vec, b_vec, c_vec, m_vec)
    out = jax.block_until_ready(out)

    # --- pure-numpy reference check (original formulation with the divide) ---
    scaled_ref = (x_num - x_min) / scale * (OUT_MAX - OUT_MIN) + OUT_MIN
    codes_exp = np.concatenate(
        [np.broadcast_to(x_np[:, ci:ci + 1], (N, len(cats)))
         for ci, cats in zip(cat_idx, categories)], axis=1)    # (N, Tc)
    enc_ref = np.maximum(1.0 - (codes_exp - cat_vals[None, :]) ** 2, 0.0)
    ref = np.concatenate([scaled_ref, enc_ref], axis=1)

    assert out.shape == (N, T)
    assert np.allclose(np.asarray(out), ref, atol=1e-5)

    print("KERNEL_OK")
</pallas_src>

<mosaic_0001>
module attributes {stable_mosaic.version = 11 : i64} {
  func.func @kernel(%arg0: i32, %arg1: memref<16x8xf32, #tpu.memory_space<vmem>>, %arg2: memref<8x128xf32, #tpu.memory_space<vmem>>, %arg3: memref<4x128xf32, #tpu.memory_space<vmem>>, %arg4: memref<16x13xf32, #tpu.memory_space<vmem>>) attributes {dimension_semantics = [#tpu.dimension_semantics<parallel>], iteration_bounds = array<i64: 1>, scalar_prefetch = 0 : i64, scratch_operands = 0 : i64, tpu.core_type = #tpu.core_type<tc>, window_params = [{transform_indices = @transform_0, window_bounds = array<i64: 16, 8>}, {pipeline_mode = #tpu.pipeline_mode<synchronous>, transform_indices = @transform_1, window_bounds = array<i64: 8, 128>}, {pipeline_mode = #tpu.pipeline_mode<synchronous>, transform_indices = @transform_2, window_bounds = array<i64: 4, 128>}, {transform_indices = @transform_3, window_bounds = array<i64: 16, 13>}]} {
    %c0 = arith.constant 0 : index
    %c0_0 = arith.constant 0 : index
    %0 = vector.load %arg1[%c0, %c0_0] : memref<16x8xf32, #tpu.memory_space<vmem>>, vector<16x8xf32>
    %c0_1 = arith.constant 0 : index
    %c0_2 = arith.constant 0 : index
    %1 = vector.load %arg2[%c0_1, %c0_2] : memref<8x128xf32, #tpu.memory_space<vmem>>, vector<8x128xf32>
    %cst = arith.constant dense<0.000000e+00> : vector<16x128xf32>
    %2 = tpu.matmul %0, %1, %cst {dimension_numbers = #tpu.dot_dimension_numbers<[1], [0], [0], [1], [0, 0, 1, 1], [], []>} : vector<16x8xf32>, vector<8x128xf32>, vector<16x128xf32> -> vector<16x128xf32>
    %c0_3 = arith.constant 0 : index
    %c0_4 = arith.constant 0 : index
    %3 = vector.load %arg3[%c0_3, %c0_4] : memref<4x128xf32, #tpu.memory_space<vmem>>, vector<4x128xf32>
    %4 = vector.extract_strided_slice %3 {offsets = [0, 0], sizes = [1, 128], strides = [1, 1]} : vector<4x128xf32> to vector<1x128xf32>
    %5 = vector.extract_strided_slice %3 {offsets = [1, 0], sizes = [1, 128], strides = [1, 1]} : vector<4x128xf32> to vector<1x128xf32>
    %6 = vector.extract_strided_slice %3 {offsets = [2, 0], sizes = [1, 128], strides = [1, 1]} : vector<4x128xf32> to vector<1x128xf32>
    %7 = vector.extract_strided_slice %3 {offsets = [3, 0], sizes = [1, 128], strides = [1, 1]} : vector<4x128xf32> to vector<1x128xf32>
    %8 = vector.broadcast %4 : vector<1x128xf32> to vector<16x128xf32>
    %9 = arith.mulf %2, %8 : vector<16x128xf32>
    %10 = vector.broadcast %5 : vector<1x128xf32> to vector<16x128xf32>
    %11 = arith.addf %9, %10 : vector<16x128xf32>
    %12 = vector.broadcast %6 : vector<1x128xf32> to vector<16x128xf32>
    %13 = arith.subf %2, %12 : vector<16x128xf32>
    %14 = arith.mulf %13, %13 : vector<16x128xf32>
    %cst_5 = arith.constant 1.000000e+00 : f32
    %15 = vector.broadcast %cst_5 : f32 to vector<16x128xf32>
    %16 = arith.subf %15, %14 : vector<16x128xf32>
    %cst_6 = arith.constant 0.000000e+00 : f32
    %17 = vector.broadcast %cst_6 : f32 to vector<16x128xf32>
    %18 = arith.maximumf %16, %17 : vector<16x128xf32>
    %cst_7 = arith.constant 5.000000e-01 : f32
    %19 = vector.broadcast %cst_7 : f32 to vector<1x128xf32>
    %20 = arith.cmpf ogt, %7, %19 : vector<1x128xf32>
    %21 = vector.shape_cast %20 : vector<1x128xi1> to vector<1x128xi1>
    %22 = vector.broadcast %21 : vector<1x128xi1> to vector<16x128xi1>
    %23 = arith.select %22, %18, %11 : vector<16x128xi1>, vector<16x128xf32>
    %24 = vector.extract_strided_slice %23 {offsets = [0, 0], sizes = [16, 13], strides = [1, 1]} : vector<16x128xf32> to vector<16x13xf32>
    %c0_8 = arith.constant 0 : index
    %c0_9 = arith.constant 0 : index
    %25 = vector.load %arg4[%c0_8, %c0_9] : memref<16x13xf32, #tpu.memory_space<vmem>>, vector<16x13xf32>
    tpu.vector_store %arg4[%c0_8, %c0_9], %24 {strides = array<i32>} : memref<16x13xf32, #tpu.memory_space<vmem>>, vector<16x13xf32>,
    return
  }
  func.func @transform_0(%arg0: i32) -> (i32, i32) {
    %c0_i32 = arith.constant 0 : i32
    %c0_i32_0 = arith.constant 0 : i32
    return %arg0, %c0_i32 : i32, i32
  }
  func.func @transform_1(%arg0: i32) -> (i32, i32) {
    %c0_i32 = arith.constant 0 : i32
    %c0_i32_0 = arith.constant 0 : i32
    %c0_i32_1 = arith.constant 0 : i32
    return %c0_i32, %c0_i32_0 : i32, i32
  }
  func.func @transform_2(%arg0: i32) -> (i32, i32) {
    %c0_i32 = arith.constant 0 : i32
    %c0_i32_0 = arith.constant 0 : i32
    %c0_i32_1 = arith.constant 0 : i32
    return %c0_i32, %c0_i32_0 : i32, i32
  }
  func.func @transform_3(%arg0: i32) -> (i32, i32) {
    %c0_i32 = arith.constant 0 : i32
    %c0_i32_0 = arith.constant 0 : i32
    return %arg0, %c0_i32 : i32, i32
  }
}

</mosaic_0001>

<bundles_post_ra>
// kernel: tpu_custom_call.1
= control target key start
LH: loop header
LB: loop body
LE: loop exit
PB: predicated region body
PF: predicated region fallthrough
CT: control target
= control target key end

     0   :  { %vm18_vm0 = vcmask 64512   ;;  %s163_s0 = inlined_call_operand.vmem [shape: f32[16,8], index: 0, kind: input, shape index: {}]   ;;  %s164_s1 = inlined_call_operand.vmem [shape: f32[8,128], index: 1, kind: input, shape index: {}]   ;;  %s165_s2 = inlined_call_operand.vmem [shape: f32[4,128], index: 2, kind: input, shape index: {}]   ;;  %s166_s3 = inlined_call_operand.hbm [shape: f32[16,13], index: 3, kind: output, shape index: {}]  }
   0x1   :  { %v17_v0 = vld [vmem:[%s164_s1] sm:$0xff]  ;;  %v16_v2 = vld [vmem:[%s163_s0 + $0x8] sm:$0xff] }
   0x2   :  { %v15_v1 = vld [vmem:[%s163_s0] sm:$0xff]  ;;  %40 = vmatpush.msra.mxu0 %v17_v0  ;;  %93 = vmatpush.msra.mxu1 %v17_v0 }
   0x3   :  { %8 = vsyncpa [#allocation3], 0  ;;  %91 = vmatmul.msk.f32.vlgmr.msra.gmra.mxu0 %vm18_vm0, %v15_v1  ;;  %92 = vmatmul.msk.f32.vlgmr.msra.gmra.mxu1 %vm18_vm0, %v16_v2  ;;  %v48_v3 = vld [vmem:[%s165_s2] sm:$0xf]  ;;  %v124_v6 = vmov 0   ;;  %s125_s0 = smov [#allocation2]  }
   0x4   :  { %vm64_vm1 = vcmp.gt.f32.partialorder %v48_v3, 0.5  ;;  %v55_v4 = vperm.slane %v48_v3, 2  ;;  %v49_v5 = vperm.slane %v48_v3, 0  ;;  %v52_v12 = vperm.slane %v48_v3, 1  ;;  %s77_s1 = sshll.u32 %s125_s0, 4  ;;  %s79_s21 = sshll.u32 %s166_s3, 4  ;;  %s78_s1 = int_to_ptr.vmem [resolvable:$true] %s77_s1  ;;  %s80_s21 = int_to_ptr.hbm [resolvable:$true] %s79_s21 }
   0x5   :  { %v65_v7 = vsel %vm64_vm1, 1, %v124_v6  ;;  %vm70_vm3 = vcmask 105472   ;;  %s126_s22 = smov 128   ;;  %s127_s23 = smov 8  }
   0x6   :  { %v66_v13 = vperm.slane %v65_v7, 3 }
   0x8   :  { %vm67_vm2 = vcmp.eq.s32.totalorder %v66_v13, 1 }
  0x80   :  { %v42_v8 = vpop.f32.mrf.mxu0  ;;  %v45_v9 = vpop.f32.mrf.mxu1 }
  0x81   :  { %v56_v10 = vsub.f32 %v42_v8, %v55_v4  ;;  %v57_v11 = vsub.f32 %v45_v9, %v55_v4  ;;  %v50_v14 = vmul.f32 %v49_v5, %v42_v8  ;;  %v51_v16 = vmul.f32 %v49_v5, %v45_v9 }
  0x83   :  { %v58_v15 = vmul.f32 %v56_v10, %v56_v10  ;;  %v59_v17 = vmul.f32 %v57_v11, %v57_v11  ;;  %v53_v20 = vadd.f32 %v52_v12, %v50_v14  ;;  %v54_v22 = vadd.f32 %v52_v12, %v51_v16 }
  0x85   :  { %v60_v18 = vsub.f32 1.0, %v58_v15  ;;  %v61_v19 = vsub.f32 1.0, %v59_v17 }
  0x87   :  { %v62_v21 = vmax.f32 %v60_v18, 0.0  ;;  %v63_v23 = vmax.f32 %v61_v19, 0.0 }
  0x89   :  { %v68_v24 = vsel %vm67_vm2, %v62_v21, %v53_v20  ;;  %v69_v25 = vsel %vm67_vm2, %v63_v23, %v54_v22 }
  0x8a   :  { %71 = vst.msk [vmem:[#allocation2] sm:$0xff] %vm70_vm3, %v68_v24 }
  0x8b   :  { %72 = vst.msk [vmem:[#allocation2 + $0x8] sm:$0xff] %vm70_vm3, %v69_v25 }
  0x8c   :  { %85 = dma.vmem_to_hbm [thread:$0]  %s78_s1, 256, %s80_s21, [#allocation3], %s126_s22, %s126_s22, %s127_s23  }
  0x8d   :  { %122 = dma.done.wait [#allocation3], 256  }
  0x8e   :  { %123 = vsyncadd [#allocation3], 4294967040 }
  0x8f   :  { %90 = vsyncpa [#allocation3], 1 }

</bundles_post_ra>
